<compile_context>
chip_gen: v7x
topology: tpu7x:2x2x1
jax: 0.10.0
libtpu: 0.0.40
codegen_flags: <defaults>
</compile_context>

<pallas_src>
import functools

import jax
import jax.numpy as jnp
from jax.experimental import pallas as pl
from jax.experimental.pallas import tpu as pltpu


def _round_up(x, m):
    return ((x + m - 1) // m) * m


def _sep_hnn_kernel(x_ref, w1_ref, b1_ref, w2_ref, b2_ref, w3_ref, b3_ref,
                    o_ref, *, act_dtype):
    """One batch tile of the fused Hq(q) + Hp(p) via block-diagonal weights.

    x_ref : [tb, 2d]   f32, q and p concatenated (original input layout)
    w1_ref: [2d, Hp]   bf16 block-diag(w1q, w1p), zero-padded to Hp lanes
    b1_ref: [1, Hp]    f32
    w2_ref: [Hp, Hp]   bf16 block-diag(w2q, w2p), zero-padded
    b2_ref: [1, Hp]    f32
    w3_ref: [1, Hp]    f32 concat(w3q, w3p) row, zero-padded
    b3_ref: [1, 1]     f32, b3q + b3p
    o_ref : [tb, 1]    f32 result
    """
    mxu_dtype = w1_ref.dtype
    x = x_ref[...].astype(mxu_dtype)                  # bf16 operand for the MXU
    z1 = jnp.dot(x, w1_ref[...],
                 preferred_element_type=jnp.float32) + b1_ref[...]
    h1 = jnp.tanh(z1.astype(act_dtype))               # f32 by default (v5e-safe)
    z2 = jnp.dot(h1.astype(mxu_dtype), w2_ref[...],
                 preferred_element_type=jnp.float32) + b2_ref[...]
    h2 = jnp.tanh(z2.astype(act_dtype)).astype(jnp.float32)
    # Final Linear(2H, 1): VPU multiply + XLU lane reduce (keeps the MXU free).
    res = jnp.sum(h2 * w3_ref[...], axis=-1, keepdims=True) + b3_ref[...]
    o_ref[...] = res.astype(o_ref.dtype)


def pack_params(params, *, matmul_dtype=jnp.bfloat16):
    """Fuse q/p branches into block-diagonal weights, pad hidden to 128 lanes.

    Matmul weights (w1, w2) are stored in `matmul_dtype` (bf16 by default: the
    MXU is bf16-native on v5e/v6e/v7x).  Biases, w3 and b3 stay f32.  Padded
    lanes are exactly zero, so tanh(0)=0 propagates zero contributions.
    """
    d, hidden = params["w1q"].shape
    h2 = 2 * hidden
    hp = _round_up(h2, 128)
    f32 = jnp.float32

    w1 = jnp.zeros((2 * d, hp), f32)
    w1 = w1.at[:d, :hidden].set(params["w1q"])
    w1 = w1.at[d:, hidden:h2].set(params["w1p"])

    b1 = jnp.zeros((1, hp), f32)
    b1 = b1.at[:, :hidden].set(params["b1q"])
    b1 = b1.at[:, hidden:h2].set(params["b1p"])

    w2 = jnp.zeros((hp, hp), f32)
    w2 = w2.at[:hidden, :hidden].set(params["w2q"])
    w2 = w2.at[hidden:h2, hidden:h2].set(params["w2p"])

    b2 = jnp.zeros((1, hp), f32)
    b2 = b2.at[:, :hidden].set(params["b2q"])
    b2 = b2.at[:, hidden:h2].set(params["b2p"])

    w3 = jnp.zeros((1, hp), f32)
    w3 = w3.at[:, :hidden].set(params["w3q"][:, 0])
    w3 = w3.at[:, hidden:h2].set(params["w3p"][:, 0])

    b3 = (params["b3q"] + params["b3p"]).reshape(1, 1).astype(f32)
    return (w1.astype(matmul_dtype), b1, w2.astype(matmul_dtype), b2, w3, b3)


def sep_hnn_forward(x, params, *, tb=2048, matmul_dtype=jnp.bfloat16,
                    act_dtype=jnp.float32):
    """x: [B, input_dim] float32.  Returns [B, 1] = Hq(q) + Hp(p).

    act_dtype: keep jnp.float32 on v5e (no bf16 VPU/EUP); jnp.bfloat16 halves
    EUP/tanh work and intermediate traffic on v6e/v7x if accuracy allows.
    """
    B, input_dim = x.shape
    assert input_dim % 2 == 0
    x = x.astype(jnp.float32)

    w1, b1, w2, b2, w3, b3 = pack_params(params, matmul_dtype=matmul_dtype)

    # Batch tiling: large tiles amortize the ~0.35us per-grid-step overhead;
    # tb is a multiple of 8 sublanes; ragged batches are zero-padded and the
    # padded rows sliced off afterwards.
    tb = max(8, min(_round_up(tb, 8), _round_up(B, 8)))
    # Medium/large batches: keep grid >= 2 so both v7x TensorCores get a share
    # of the (parallel) batch axis.  No-op for tiny batches.
    if B >= 256:
        tb = min(tb, _round_up((B + 1) // 2, 8))
    b_pad = _round_up(B, tb)
    if b_pad != B:
        x = jnp.pad(x, ((0, b_pad - B), (0, 0)))

    grid = (b_pad // tb,)

    # Resident weights: constant index_map -> fetched once.  Once they are big
    # enough to matter, drop to single-buffering to halve their VMEM footprint
    # (w2 grows as (2*H_pad)^2; relevant for hidden >= 512 on v7x).
    weight_arrays = (w1, b1, w2, b2, w3, b3)
    weight_bytes = sum(a.size * a.dtype.itemsize for a in weight_arrays)
    single_buffer_weights = weight_bytes > (4 << 20)

    def full_spec(arr):
        if single_buffer_weights:
            return pl.BlockSpec(arr.shape, lambda i: (0, 0),
                                pipeline_mode=pl.Buffered(1))
        return pl.BlockSpec(arr.shape, lambda i: (0, 0))

    # VMEM per step (tb=2048, Hp=128): x 64 KiB, weights ~37 KiB, output 8 KiB,
    # double-buffered -- far below the default scoped VMEM limit on every
    # generation (incl. v7x), so no vmem_limit_bytes override is needed.
    out = pl.pallas_call(
        functools.partial(_sep_hnn_kernel, act_dtype=act_dtype),
        out_shape=jax.ShapeDtypeStruct((b_pad, 1), jnp.float32),
        grid_spec=pltpu.PrefetchScalarGridSpec(
            num_scalar_prefetch=0,
            grid=grid,
            in_specs=[pl.BlockSpec((tb, input_dim), lambda i: (i, 0)),
                      full_spec(w1), full_spec(b1),
                      full_spec(w2), full_spec(b2),
                      full_spec(w3), full_spec(b3)],
            out_specs=pl.BlockSpec((tb, 1), lambda i: (i, 0)),
        ),
        compiler_params=pltpu.CompilerParams(
            dimension_semantics=("parallel",)),
    )(x, w1, b1, w2, b2, w3, b3)

    return out[:B]


def init_params(key, input_dim, hidden_dim):
    """Deterministic init mimicking nn.Linear's U(-1/sqrt(fan_in), 1/sqrt(fan_in))."""
    d = input_dim // 2
    keys = jax.random.split(key, 12)
    ki = iter(keys)

    def linear(kw, kb, fan_in, fan_out):
        bound = 1.0 / jnp.sqrt(fan_in)
        w = jax.random.uniform(kw, (fan_in, fan_out), jnp.float32, -bound, bound)
        b = jax.random.uniform(kb, (1, fan_out), jnp.float32, -bound, bound)
        return w, b

    params = {}
    for branch in ("q", "p"):
        w1, b1 = linear(next(ki), next(ki), d, hidden_dim)
        w2, b2 = linear(next(ki), next(ki), hidden_dim, hidden_dim)
        w3, b3 = linear(next(ki), next(ki), hidden_dim, 1)
        params[f"w1{branch}"], params[f"b1{branch}"] = w1, b1
        params[f"w2{branch}"], params[f"b2{branch}"] = w2, b2
        params[f"w3{branch}"], params[f"b3{branch}"] = w3, b3
    return params


def reference_forward(x, params, *, matmul_dtype=jnp.float32):
    """Pure-JAX reference.  matmul_dtype=bfloat16 emulates the kernel's MXU casts."""
    d = x.shape[-1] // 2
    q, p = x[:, :d], x[:, d:]

    def lin(h, w):
        return jnp.dot(h.astype(matmul_dtype), w.astype(matmul_dtype),
                       preferred_element_type=jnp.float32)

    def mlp(z, suf):
        h = jnp.tanh(lin(z, params[f"w1{suf}"]) + params[f"b1{suf}"])
        h = jnp.tanh(lin(h, params[f"w2{suf}"]) + params[f"b2{suf}"])
        return h @ params[f"w3{suf}"] + params[f"b3{suf}"]

    return mlp(q, "q") + mlp(p, "p")


if __name__ == "__main__":
    key = jax.random.PRNGKey(0)
    k_param, k_x = jax.random.split(key)

    input_dim = 8     # -> d = 4
    hidden_dim = 32
    batch = 16

    params = init_params(k_param, input_dim, hidden_dim)
    x = jax.random.normal(k_x, (batch, input_dim), dtype=jnp.float32)

    out = jax.block_until_ready(sep_hnn_forward(x, params))
    assert out.shape == (batch, 1)

    # Tight check vs a reference applying the same bf16 MXU-operand rounding as
    # the kernel; looser sanity bound vs the pure-f32 reference (documents the
    # bf16-matmul accuracy delta — re-evaluate if HNN energy tracking needs f32).
    ref_bf16 = reference_forward(x, params, matmul_dtype=jnp.bfloat16)
    ref_f32 = reference_forward(x, params)
    assert jnp.allclose(out, ref_bf16, atol=5e-3, rtol=5e-3), "mismatch vs bf16-matched reference"
    max_err = float(jnp.max(jnp.abs(out - ref_f32)))
    assert max_err < 1e-1, f"bf16 matmul path drifted too far from f32 reference: {max_err}"

    # Ragged batch + multi-step grid path (exercises padding and grid > 1).
    x2 = jax.random.normal(jax.random.PRNGKey(1), (13, input_dim), dtype=jnp.float32)
    out2 = jax.block_until_ready(sep_hnn_forward(x2, params, tb=8))
    assert out2.shape == (13, 1)
    assert jnp.allclose(out2, reference_forward(x2, params, matmul_dtype=jnp.bfloat16),
                        atol=5e-3, rtol=5e-3), "mismatch (ragged)"

    # Medium batch: exercises the grid >= 2 clamp (v7x dual-TensorCore path).
    x3 = jax.random.normal(jax.random.PRNGKey(2), (600, input_dim), dtype=jnp.float32)
    out3 = jax.block_until_ready(sep_hnn_forward(x3, params))
    assert out3.shape == (600, 1)
    assert jnp.allclose(out3, reference_forward(x3, params, matmul_dtype=jnp.bfloat16),
                        atol=5e-3, rtol=5e-3), "mismatch (medium batch)"

    print("KERNEL_OK")
</pallas_src>

<mosaic_0001>
module attributes {stable_mosaic.version = 11 : i64} {
  func.func @_sep_hnn_kernel(%arg0: i32, %arg1: memref<16x8xf32, #tpu.memory_space<vmem>>, %arg2: memref<8x128xbf16, #tpu.memory_space<vmem>>, %arg3: memref<1x128xf32, #tpu.memory_space<vmem>>, %arg4: memref<128x128xbf16, #tpu.memory_space<vmem>>, %arg5: memref<1x128xf32, #tpu.memory_space<vmem>>, %arg6: memref<1x128xf32, #tpu.memory_space<vmem>>, %arg7: memref<1x1xf32, #tpu.memory_space<vmem>>, %arg8: memref<16x1xf32, #tpu.memory_space<vmem>>) attributes {dimension_semantics = [#tpu.dimension_semantics<parallel>], iteration_bounds = array<i64: 1>, scalar_prefetch = 0 : i64, scratch_operands = 0 : i64, tpu.core_type = #tpu.core_type<tc>, window_params = [{transform_indices = @transform_0, window_bounds = array<i64: 16, 8>}, {pipeline_mode = #tpu.pipeline_mode<synchronous>, transform_indices = @transform_1, window_bounds = array<i64: 8, 128>}, {pipeline_mode = #tpu.pipeline_mode<synchronous>, transform_indices = @transform_2, window_bounds = array<i64: 1, 128>}, {pipeline_mode = #tpu.pipeline_mode<synchronous>, transform_indices = @transform_3, window_bounds = array<i64: 128, 128>}, {pipeline_mode = #tpu.pipeline_mode<synchronous>, transform_indices = @transform_4, window_bounds = array<i64: 1, 128>}, {pipeline_mode = #tpu.pipeline_mode<synchronous>, transform_indices = @transform_5, window_bounds = array<i64: 1, 128>}, {pipeline_mode = #tpu.pipeline_mode<synchronous>, transform_indices = @transform_6, window_bounds = array<i64: 1, 1>}, {transform_indices = @transform_7, window_bounds = array<i64: 16, 1>}]} {
    %c0 = arith.constant 0 : index
    %c0_0 = arith.constant 0 : index
    %0 = vector.load %arg1[%c0, %c0_0] : memref<16x8xf32, #tpu.memory_space<vmem>>, vector<16x8xf32>
    %1 = arith.truncf %0 : vector<16x8xf32> to vector<16x8xbf16>
    %c0_1 = arith.constant 0 : index
    %c0_2 = arith.constant 0 : index
    %2 = vector.load %arg2[%c0_1, %c0_2] : memref<8x128xbf16, #tpu.memory_space<vmem>>, vector<8x128xbf16>
    %cst = arith.constant dense<0.000000e+00> : vector<16x128xf32>
    %3 = tpu.matmul %1, %2, %cst {dimension_numbers = #tpu.dot_dimension_numbers<[1], [0], [0], [1], [0, 0, 1, 1], [], []>} : vector<16x8xbf16>, vector<8x128xbf16>, vector<16x128xf32> -> vector<16x128xf32>
    %c0_3 = arith.constant 0 : index
    %c0_4 = arith.constant 0 : index
    %4 = vector.load %arg3[%c0_3, %c0_4] : memref<1x128xf32, #tpu.memory_space<vmem>>, vector<1x128xf32>
    %5 = vector.broadcast %4 : vector<1x128xf32> to vector<16x128xf32>
    %6 = arith.addf %3, %5 : vector<16x128xf32>
    %7 = math.tanh %6 : vector<16x128xf32>
    %8 = arith.truncf %7 : vector<16x128xf32> to vector<16x128xbf16>
    %c0_5 = arith.constant 0 : index
    %c0_6 = arith.constant 0 : index
    %9 = vector.load %arg4[%c0_5, %c0_6] : memref<128x128xbf16, #tpu.memory_space<vmem>>, vector<128x128xbf16>
    %cst_7 = arith.constant dense<0.000000e+00> : vector<16x128xf32>
    %10 = tpu.matmul %8, %9, %cst_7 {dimension_numbers = #tpu.dot_dimension_numbers<[1], [0], [0], [1], [0, 0, 1, 1], [], []>} : vector<16x128xbf16>, vector<128x128xbf16>, vector<16x128xf32> -> vector<16x128xf32>
    %c0_8 = arith.constant 0 : index
    %c0_9 = arith.constant 0 : index
    %11 = vector.load %arg5[%c0_8, %c0_9] : memref<1x128xf32, #tpu.memory_space<vmem>>, vector<1x128xf32>
    %12 = vector.broadcast %11 : vector<1x128xf32> to vector<16x128xf32>
    %13 = arith.addf %10, %12 : vector<16x128xf32>
    %14 = math.tanh %13 : vector<16x128xf32>
    %c0_10 = arith.constant 0 : index
    %c0_11 = arith.constant 0 : index
    %15 = vector.load %arg6[%c0_10, %c0_11] : memref<1x128xf32, #tpu.memory_space<vmem>>, vector<1x128xf32>
    %16 = vector.broadcast %15 : vector<1x128xf32> to vector<16x128xf32>
    %17 = arith.mulf %14, %16 : vector<16x128xf32>
    %cst_12 = arith.constant dense<0.000000e+00> : vector<16xf32>
    %18 = vector.multi_reduction <add>, %17, %cst_12 [1] : vector<16x128xf32> to vector<16xf32>
    %19 = vector.shape_cast %18 : vector<16xf32> to vector<16x1xf32>
    %c0_13 = arith.constant 0 : index
    %c0_14 = arith.constant 0 : index
    %20 = vector.load %arg7[%c0_13, %c0_14] : memref<1x1xf32, #tpu.memory_space<vmem>>, vector<1x1xf32>
    %21 = vector.broadcast %20 : vector<1x1xf32> to vector<16x1xf32>
    %22 = arith.addf %19, %21 : vector<16x1xf32>
    %c0_15 = arith.constant 0 : index
    %c0_16 = arith.constant 0 : index
    %23 = vector.load %arg8[%c0_15, %c0_16] : memref<16x1xf32, #tpu.memory_space<vmem>>, vector<16x1xf32>
    tpu.vector_store %arg8[%c0_15, %c0_16], %22 {strides = array<i32>} : memref<16x1xf32, #tpu.memory_space<vmem>>, vector<16x1xf32>,
    return
  }
  func.func @transform_0(%arg0: i32) -> (i32, i32) {
    %c0_i32 = arith.constant 0 : i32
    %c0_i32_0 = arith.constant 0 : i32
    return %arg0, %c0_i32 : i32, i32
  }
  func.func @transform_1(%arg0: i32) -> (i32, i32) {
    %c0_i32 = arith.constant 0 : i32
    %c0_i32_0 = arith.constant 0 : i32
    %c0_i32_1 = arith.constant 0 : i32
    return %c0_i32, %c0_i32_0 : i32, i32
  }
  func.func @transform_2(%arg0: i32) -> (i32, i32) {
    %c0_i32 = arith.constant 0 : i32
    %c0_i32_0 = arith.constant 0 : i32
    %c0_i32_1 = arith.constant 0 : i32
    return %c0_i32, %c0_i32_0 : i32, i32
  }
  func.func @transform_3(%arg0: i32) -> (i32, i32) {
    %c0_i32 = arith.constant 0 : i32
    %c0_i32_0 = arith.constant 0 : i32
    %c0_i32_1 = arith.constant 0 : i32
    return %c0_i32, %c0_i32_0 : i32, i32
  }
  func.func @transform_4(%arg0: i32) -> (i32, i32) {
    %c0_i32 = arith.constant 0 : i32
    %c0_i32_0 = arith.constant 0 : i32
    %c0_i32_1 = arith.constant 0 : i32
    return %c0_i32, %c0_i32_0 : i32, i32
  }
  func.func @transform_5(%arg0: i32) -> (i32, i32) {
    %c0_i32 = arith.constant 0 : i32
    %c0_i32_0 = arith.constant 0 : i32
    %c0_i32_1 = arith.constant 0 : i32
    return %c0_i32, %c0_i32_0 : i32, i32
  }
  func.func @transform_6(%arg0: i32) -> (i32, i32) {
    %c0_i32 = arith.constant 0 : i32
    %c0_i32_0 = arith.constant 0 : i32
    %c0_i32_1 = arith.constant 0 : i32
    return %c0_i32, %c0_i32_0 : i32, i32
  }
  func.func @transform_7(%arg0: i32) -> (i32, i32) {
    %c0_i32 = arith.constant 0 : i32
    %c0_i32_0 = arith.constant 0 : i32
    return %arg0, %c0_i32 : i32, i32
  }
}

</mosaic_0001>

<bundles_post_ra>
// kernel: tpu_custom_call.1
= control target key start
LH: loop header
LB: loop body
LE: loop exit
PB: predicated region body
PF: predicated region fallthrough
CT: control target
= control target key end

     0   :  { %s429_s0 = inlined_call_operand.vmem [shape: f32[16,8], index: 0, kind: input, shape index: {}]   ;;  %s430_s1 = inlined_call_operand.vmem [shape: bf16[8,128], index: 1, kind: input, shape index: {}]   ;;  %s431_s2 = inlined_call_operand.vmem [shape: f32[1,128], index: 2, kind: input, shape index: {}]   ;;  %s432_s3 = inlined_call_operand.hbm [shape: bf16[128,128], index: 3, kind: input, shape index: {}]   ;;  %s433_s4 = inlined_call_operand.vmem [shape: f32[1,128], index: 4, kind: input, shape index: {}]   ;;  %s434_s5 = inlined_call_operand.vmem [shape: f32[1,128], index: 5, kind: input, shape index: {}]   ;;  %s435_s6 = inlined_call_operand.<no memory space> [shape: f32[1,1], index: 6, kind: input, shape index: {}]   ;;  %s436_s7 = inlined_call_operand.vmem [shape: f32[16,1], index: 7, kind: output, shape index: {}]  }
   0x1   :  { %v12_v0 = vstv %s435_s6 }
   0x2   :  { %13 = vst [vmem:[#allocation2] sm:$0x1] %v12_v0 }
   0x3   :  { %14 = vsyncpa [#allocation4], 0  ;;  %s345_s26 = smov [#allocation3]   ;;  %s321_s30 = scalar_lea.hbm %s432_s3, 1024 }
   0x4   :  { %s26_s27 = sshll.u32 %s345_s26, 4  ;;  %p322_p0 = scmp.ne.s32.totalorder %s432_s3, %s321_s30  ;;  %s27_s27 = int_to_ptr.vmem [resolvable:$true] %s26_s27 }
   0x5   :  { %p325_p1 = scmp.lt.u32.totalorder %s321_s30, %s432_s3 }
   0x7   :  { %p327_p2 = pnand %p325_p1, %p322_p0 }
   0x9   :  { %330 = shalt.err (!%p327_p2)
}
   0xa   :  { %s331_s6 = scalar_lea.vmem %s27_s27, 1024  ;;  %p336_p4 = scmp.lt.s32.totalorder %s27_s27, %s27_s27 }
   0xb   :  { %p332_p3 = scmp.ne.s32.totalorder %s27_s27, %s331_s6  ;;  %p337_p5 = scmp.lt.s32.totalorder %s331_s6, %s331_s6 }
   0xd   :  { %p338_p6 = por %p337_p5, %p336_p4 }
   0xf   :  { %p339_p7 = pnand %p338_p6, %p332_p3 }
  0x11   :  { %342 = shalt.err (!%p339_p7)
}
  0x12   :  { %s346_s12 = smov 64   ;;  %s347_s13 = smov 4  }
  0x13   :  { %32 = dma.hbm_to_vmem [thread:$0]  %s432_s3, 1024, %s27_s27, [#allocation4], %s346_s12, %s346_s12, %s347_s13  }
  0x14   :  { %343 = dma.done.wait [#allocation4], 1024  }
  0x15   :  { %344 = vsyncadd [#allocation4], 4294966272  ;;  %v348_v1 = vmov 0.0   ;;  %vm349_vm0 = vmmov 0   ;;  %vm58_vm1 = vcmask 1043456   ;;  %v43_v3 = vld [vmem:[%s429_s0] sm:$0xff] }
  0x16   :  { %274 = vmatprep.subr.bf16.mxu0 %v348_v1  ;;  %276 = vmatprep.mubr.msk.bf16.mxu0 %vm349_vm0, %v348_v1  ;;  %v46_v2 = vld [vmem:[%s430_s1] sm:$0xf]  ;;  %v44_v4 = vld [vmem:[%s429_s0 + $0x8] sm:$0xff]  ;;  %vm54_vm2 = vcmask 64512   ;;  %v307_v9 = vld [vmem:[#allocation3 + $0x10] sm:$0xff]   ;;  %vm242_vm3 = vcmask 7168  }
  0x17   :  { %280 = vmatprep.subr.bf16.mxu1 %v348_v1  ;;  %296 = vmatprep.mubr.msk.bf16.mxu1 %vm349_vm0, %v348_v1  ;;  %v60_v5 = vsel %vm58_vm1, %v46_v2, 0  ;;  %v45_v6 = vpack.c.bf16 %v44_v4, %v43_v3  ;;  %v305_v7 = vld [vmem:[#allocation3] sm:$0xff]   ;;  %v306_v8 = vld [vmem:[#allocation3 + $0x8] sm:$0xff]   ;;  %v308_v10 = vld [vmem:[#allocation3 + $0x18] sm:$0xff]  }
  0x18   :  { %275 = vmatpush3.bf16.msra.mxu0 %v60_v5  ;;  %281 = vmatpush3.bf16.msra.mxu1 %v305_v7  ;;  %v309_v11 = vld [vmem:[#allocation3 + $0x20] sm:$0xff]   ;;  %v310_v12 = vld [vmem:[#allocation3 + $0x28] sm:$0xff]   ;;  %v311_v13 = vld [vmem:[#allocation3 + $0x30] sm:$0xff]  }
  0x19   :  { %282 = vmatprep.subr.bf16.mxu1 %v348_v1  ;;  %v312_v14 = vld [vmem:[#allocation3 + $0x38] sm:$0xff]  }
  0x1a   :  { %v250_v15 = vld [vmem:[%s431_s2] ss:$0 sm:$0xff] }
  0x1b   :  { %277 = vmatmul.mubr.msk.bf16.vlgmr.msra.gmra.mrb[0].mxu0 %vm54_vm2, %v45_v6  ;;  %v252_v25 = vld [vmem:[%s433_s4] ss:$0 sm:$0xff] }
  0x1c   :  { %283 = vmatpush3.bf16.msra.mxu1 %v306_v8  ;;  %v261_v32 = vld [vmem:[%s434_s5] ss:$0 sm:$0xff] }
  0x1d   :  { %284 = vmatprep.subr.bf16.mxu1 %v348_v1  ;;  %v262_v37 = vld [vmem:[#allocation2] ss:$0 sm:$0xff] }
  0x20   :  { %285 = vmatpush3.bf16.msra.mxu1 %v307_v9 }
  0x21   :  { %286 = vmatprep.subr.bf16.mxu1 %v348_v1 }
  0x24   :  { %287 = vmatpush3.bf16.msra.mxu1 %v308_v10 }
  0x25   :  { %288 = vmatprep.subr.bf16.mxu1 %v348_v1 }
  0x28   :  { %289 = vmatpush3.bf16.msra.mxu1 %v309_v11 }
  0x29   :  { %290 = vmatprep.subr.bf16.mxu1 %v348_v1 }
  0x2c   :  { %291 = vmatpush3.bf16.msra.mxu1 %v310_v12 }
  0x2d   :  { %292 = vmatprep.subr.bf16.mxu1 %v348_v1 }
  0x30   :  { %293 = vmatpush3.bf16.msra.mxu1 %v311_v13 }
  0x31   :  { %294 = vmatprep.subr.bf16.mxu1 %v348_v1 }
  0x34   :  { %295 = vmatpush3.bf16.msra.mxu1 %v312_v14 }
  0xee   :  { %v96_v16 = vpop.f32.mrb[0].mxu0 }
  0xef   :  { %v97_v17 = vadd.f32 %v250_v15, %v96_v16  ;;  %v278_v18 = vpop.f32.mrb[1].mxu0 }
  0xf0   :  { %v99_v19 = vpop.f32.mrb[2].mxu0 }
  0xf1   :  { %v100_v20 = vadd.f32 %v250_v15, %v99_v19  ;;  %v279_v21 = vpop.f32.mrb[3].mxu0  ;;  %313 = vtanh.f32 %v97_v17 }
  0xf3   :  { %315 = vtanh.f32 %v100_v20 }
  0xfb   :  { %v314_v22 = vpop.eup %313 }
  0xfd   :  { %v316_v23 = vpop.eup %315 }
  0xfe   :  { %v105_v24 = vpack.c.bf16 %v316_v23, %v314_v22 }
 0x100   :  { %297 = vmatmul.mubr.bf16.vlgmr.msra.gmra.mrb[0].mxu1 %v105_v24 }
 0x1d3   :  { %v211_v26 = vpop.f32.mrb[0].mxu1 }
 0x1d4   :  { %v212_v27 = vadd.f32 %v252_v25, %v211_v26  ;;  %v298_v28 = vpop.f32.mrb[1].mxu1 }
 0x1d5   :  { %v214_v29 = vpop.f32.mrb[2].mxu1 }
 0x1d6   :  { %317 = vtanh.f32 %v212_v27  ;;  %v215_v30 = vadd.f32 %v252_v25, %v214_v29  ;;  %v299_v31 = vpop.f32.mrb[3].mxu1 }
 0x1d8   :  { %319 = vtanh.f32 %v215_v30 }
 0x1e0   :  { %v318_v33 = vpop.eup %317 }
 0x1e1   :  { %v227_v34 = vmul.f32 %v318_v33, %v261_v32 }
 0x1e2   :  { %v320_v35 = vpop.eup %319 }
 0x1e3   :  { %229 = vadd.xlane.f32.xlu0 %v227_v34  ;;  %v228_v36 = vmul.f32 %v320_v35, %v261_v32 }
 0x1e7   :  { %231 = vadd.xlane.f32.xlu0 %v228_v36 }
 0x270   :  { %v230_v38 = vpop.xlane.xlu0 %229 }
 0x271   :  { %v240_v39 = vadd.f32 %v262_v37, %v230_v38 }
 0x273   :  { %243 = vst.msk [vmem:[%s436_s7] sm:$0xff] %vm242_vm3, %v240_v39 }
 0x274   :  { %v232_v40 = vpop.xlane.xlu0 %231 }
 0x275   :  { %v241_v41 = vadd.f32 %v262_v37, %v232_v40 }
 0x277   :  { %244 = vst.msk [vmem:[%s436_s7 + $0x8] sm:$0xff] %vm242_vm3, %v241_v41 }
 0x278   :  { %249 = vsyncpa [#allocation4], 1 }

</bundles_post_ra>
